<compile_context>
chip_gen: v6e
topology: v6e:2x2x1
jax: 0.10.0
libtpu: 0.0.40
codegen_flags: <defaults>
</compile_context>

<pallas_src>
import jax
import jax.numpy as jnp
from jax.experimental import pallas as pl
from jax.experimental.pallas import tpu as pltpu


def _score_kernel(emb_ref, enc_ref, rep_ref, wt_ref, b_ref, out_ref):
    enc = enc_ref[...]                                                  # (tg, Hp) bf16
    # v[g, :] = W @ enc[g]   computed as enc @ W^T on the MXU (f32 accumulate).
    v = jnp.dot(enc, wt_ref[...], preferred_element_type=jnp.float32)   # (tg, Dp)
    # c[g] = bias . enc[g]
    c = jnp.sum(enc.astype(jnp.float32) * b_ref[...],
                axis=-1, keepdims=True)                                 # (tg, 1)
    # Replicate per-group rows to per-(group, option) rows with a tiny 0/1
    # matmul -- keeps every op 2-D (no in-kernel reshape/sublane broadcast).
    rep = rep_ref[...]                                                  # (tm, tg) f32
    v_rows = jnp.dot(rep, v, preferred_element_type=jnp.float32)        # (tm, Dp)
    c_rows = jnp.dot(rep, c, preferred_element_type=jnp.float32)        # (tm, 1)
    # score[(g,o)] = emb[(g,o), :] . v[g, :] + c[g]
    s = jnp.sum(emb_ref[...].astype(jnp.float32) * v_rows,
                axis=-1, keepdims=True)                                 # (tm, 1)
    out_ref[...] = (s + c_rows).astype(out_ref.dtype)


def _round_up(x, m):
    return ((x + m - 1) // m) * m


def _pick_tg(G, nopt, Dp):
    # Largest group tile whose bf16 answer-embedding block stays ~<= 2 MiB so
    # double-buffered inputs + f32 temporaries fit the default 32 MiB scoped
    # VMEM with headroom for v7x's smaller (64 MiB) physical VMEM.
    tg = (2 << 20) // max(1, 2 * nopt * Dp)
    tg = max(8, min(512, (tg // 8) * 8))
    return min(tg, _round_up(G, 8))


def visdia_scores_pallas(emb, enc, w, b, nopt, *, tg=None):
    """emb: (G*nopt, D), enc: (G, H), w: (D, H), b: (H,) -> scores (G, nopt)."""
    N, D = emb.shape
    G, H = enc.shape
    assert N == G * nopt

    Dp = _round_up(D, 128)
    Hp = _round_up(H, 128)
    if tg is None:
        tg = _pick_tg(G, nopt, Dp)
    tg = max(8, (min(int(tg), _round_up(G, 8)) // 8) * 8)
    Gp = _round_up(G, tg)            # ragged group count handled by zero padding
    tm = tg * nopt                   # answer rows per grid step
    grid = (Gp // tg,)

    # Pad + cast inputs (bf16 data streams, f32 bias). Zero padding keeps the
    # math exact; padded rows produce zero scores and are sliced off.
    emb_p = jnp.zeros((Gp * nopt, Dp), jnp.bfloat16)
    emb_p = emb_p.at[:N, :D].set(emb.astype(jnp.bfloat16))
    enc_p = jnp.zeros((Gp, Hp), jnp.bfloat16)
    enc_p = enc_p.at[:G, :H].set(enc.astype(jnp.bfloat16))
    wt_p = jnp.zeros((Hp, Dp), jnp.bfloat16)
    wt_p = wt_p.at[:H, :D].set(w.T.astype(jnp.bfloat16))
    b_p = jnp.zeros((1, Hp), jnp.float32)
    b_p = b_p.at[:, :H].set(b.reshape(1, -1).astype(jnp.float32))
    # 0/1 repeat matrix: local row r belongs to local group r // nopt.
    rep = (jnp.arange(tm)[:, None] // nopt
           == jnp.arange(tg)[None, :]).astype(jnp.float32)              # (tm, tg)

    flops = (2 * Gp * Hp * Dp            # enc @ W^T
             + 2 * Gp * nopt * tg * Dp   # repeat-matrix expansion
             + 2 * Gp * nopt * Dp        # per-row dot with v
             + 2 * Gp * Hp)              # bias . enc
    bytes_accessed = (emb_p.size * 2 + enc_p.size * 2 + wt_p.size * 2
                      + b_p.size * 4 + rep.size * 4 + Gp * nopt * 4)

    out = pl.pallas_call(
        _score_kernel,
        out_shape=jax.ShapeDtypeStruct((Gp * nopt, 1), jnp.float32),
        grid_spec=pltpu.PrefetchScalarGridSpec(
            num_scalar_prefetch=0,
            grid=grid,
            in_specs=[
                pl.BlockSpec((tm, Dp), lambda i: (i, 0)),   # answer embeddings tile
                pl.BlockSpec((tg, Hp), lambda i: (i, 0)),   # encoder rows (deduplicated)
                pl.BlockSpec((tm, tg), lambda i: (0, 0)),   # repeat matrix (resident)
                pl.BlockSpec((Hp, Dp), lambda i: (0, 0)),   # W^T (resident)
                pl.BlockSpec((1, Hp), lambda i: (0, 0)),    # bias (resident)
            ],
            out_specs=pl.BlockSpec((tm, 1), lambda i: (i, 0)),
        ),
        compiler_params=pltpu.CompilerParams(
            dimension_semantics=("parallel",)),
        cost_estimate=pl.CostEstimate(
            flops=int(flops), transcendentals=0,
            bytes_accessed=int(bytes_accessed)),
    )(emb_p, enc_p, rep, wt_p, b_p)

    return out[:N, 0].reshape(G, nopt)


def visdia_discriminator_forward(encoder_output, answer_options,
                                 answer_options_len, emb_table, w, b, *, tg=None):
    """JAX glue + Pallas hot path reproducing VisDiaDiscriminator.forward."""
    B, nd, nopt, seq = answer_options.shape
    G = B * nd
    N = G * nopt

    ids = answer_options.reshape(N, seq)
    _ = answer_options_len.reshape(-1)   # parity with the reference; unused there too

    # TODO(synk): stand-in text embedding = token lookup + mean pool.
    tok = jnp.take(emb_table, ids, axis=0)       # (N, seq, D)
    emb = jnp.mean(tok, axis=1)                  # (N, D)

    return visdia_scores_pallas(emb, encoder_output, w, b, nopt, tg=tg)


if __name__ == "__main__":
    key = jax.random.PRNGKey(0)
    B, nd, nopt, seq = 2, 8, 4, 8            # batch, ndialogues, noptions, seq_len
    vocab, D_emb, H = 50, 48, 40             # vocab, embedding.text_out_dim, hidden_dim
    G, N = B * nd, B * nd * nopt

    k1, k2, k3, k4, k5 = jax.random.split(key, 5)
    emb_table = 0.1 * jax.random.normal(k1, (vocab, D_emb), jnp.float32)
    w = 0.1 * jax.random.normal(k2, (D_emb, H), jnp.float32)   # Linear weight^T layout
    bias = 0.1 * jax.random.normal(k3, (H,), jnp.float32)
    encoder_output = jax.random.normal(k4, (G, H), jnp.float32)
    answer_options = jax.random.randint(k5, (B, nd, nopt, seq), 0, vocab,
                                        dtype=jnp.int32)
    answer_options_len = jnp.full((B, nd, nopt), seq, dtype=jnp.int32)

    # tg=8 -> 2 grid steps at this small size (exercises the tiled path).
    scores = visdia_discriminator_forward(
        encoder_output, answer_options, answer_options_len,
        emb_table, w, bias, tg=8)
    jax.block_until_ready(scores)
    assert scores.shape == (G, nopt)

    # Pure-JAX reference with the same bf16 rounding of the data streams.
    ids = answer_options.reshape(N, seq)
    emb_f = jnp.mean(jnp.take(emb_table, ids, axis=0), axis=1)
    emb_bf = emb_f.astype(jnp.bfloat16).astype(jnp.float32)
    w_bf = w.astype(jnp.bfloat16).astype(jnp.float32)
    enc_bf = encoder_output.astype(jnp.bfloat16).astype(jnp.float32)
    proj_ref = emb_bf @ w_bf + bias[None, :]
    scores_ref = jnp.sum(proj_ref.reshape(G, nopt, H) * enc_bf[:, None, :], axis=2)

    err = float(jnp.max(jnp.abs(scores - scores_ref)))
    assert jnp.allclose(scores, scores_ref, atol=1e-3, rtol=1e-3), err

    print("KERNEL_OK")
</pallas_src>

<mosaic_0001>
module attributes {stable_mosaic.version = 11 : i64} {
  func.func @_score_kernel(%arg0: i32, %arg1: memref<32x128xbf16, #tpu.memory_space<vmem>>, %arg2: memref<8x128xbf16, #tpu.memory_space<vmem>>, %arg3: memref<32x8xf32, #tpu.memory_space<vmem>>, %arg4: memref<128x128xbf16, #tpu.memory_space<vmem>>, %arg5: memref<1x128xf32, #tpu.memory_space<vmem>>, %arg6: memref<32x1xf32, #tpu.memory_space<vmem>>) attributes {dimension_semantics = [#tpu.dimension_semantics<parallel>], iteration_bounds = array<i64: 2>, scalar_prefetch = 0 : i64, scratch_operands = 0 : i64, tpu.core_type = #tpu.core_type<tc>, window_params = [{transform_indices = @transform_0, window_bounds = array<i64: 32, 128>}, {transform_indices = @transform_1, window_bounds = array<i64: 8, 128>}, {pipeline_mode = #tpu.pipeline_mode<synchronous>, transform_indices = @transform_2, window_bounds = array<i64: 32, 8>}, {pipeline_mode = #tpu.pipeline_mode<synchronous>, transform_indices = @transform_3, window_bounds = array<i64: 128, 128>}, {pipeline_mode = #tpu.pipeline_mode<synchronous>, transform_indices = @transform_4, window_bounds = array<i64: 1, 128>}, {transform_indices = @transform_5, window_bounds = array<i64: 32, 1>}]} {
    %c0 = arith.constant 0 : index
    %c0_0 = arith.constant 0 : index
    %0 = vector.load %arg2[%c0, %c0_0] : memref<8x128xbf16, #tpu.memory_space<vmem>>, vector<8x128xbf16>
    %c0_1 = arith.constant 0 : index
    %c0_2 = arith.constant 0 : index
    %1 = vector.load %arg4[%c0_1, %c0_2] : memref<128x128xbf16, #tpu.memory_space<vmem>>, vector<128x128xbf16>
    %cst = arith.constant dense<0.000000e+00> : vector<8x128xf32>
    %2 = tpu.matmul %0, %1, %cst {dimension_numbers = #tpu.dot_dimension_numbers<[1], [0], [0], [1], [0, 0, 1, 1], [], []>} : vector<8x128xbf16>, vector<128x128xbf16>, vector<8x128xf32> -> vector<8x128xf32>
    %3 = arith.extf %0 : vector<8x128xbf16> to vector<8x128xf32>
    %c0_3 = arith.constant 0 : index
    %c0_4 = arith.constant 0 : index
    %4 = vector.load %arg5[%c0_3, %c0_4] : memref<1x128xf32, #tpu.memory_space<vmem>>, vector<1x128xf32>
    %5 = vector.broadcast %4 : vector<1x128xf32> to vector<8x128xf32>
    %6 = arith.mulf %3, %5 : vector<8x128xf32>
    %cst_5 = arith.constant dense<0.000000e+00> : vector<8xf32>
    %7 = vector.multi_reduction <add>, %6, %cst_5 [1] : vector<8x128xf32> to vector<8xf32>
    %8 = vector.shape_cast %7 : vector<8xf32> to vector<8x1xf32>
    %c0_6 = arith.constant 0 : index
    %c0_7 = arith.constant 0 : index
    %9 = vector.load %arg3[%c0_6, %c0_7] : memref<32x8xf32, #tpu.memory_space<vmem>>, vector<32x8xf32>
    %cst_8 = arith.constant dense<0.000000e+00> : vector<32x128xf32>
    %10 = tpu.matmul %9, %2, %cst_8 {dimension_numbers = #tpu.dot_dimension_numbers<[1], [0], [0], [1], [0, 0, 1, 1], [], []>} : vector<32x8xf32>, vector<8x128xf32>, vector<32x128xf32> -> vector<32x128xf32>
    %cst_9 = arith.constant dense<0.000000e+00> : vector<32x1xf32>
    %11 = tpu.matmul %9, %8, %cst_9 {dimension_numbers = #tpu.dot_dimension_numbers<[1], [0], [0], [1], [0, 0, 1, 1], [], []>} : vector<32x8xf32>, vector<8x1xf32>, vector<32x1xf32> -> vector<32x1xf32>
    %c0_10 = arith.constant 0 : index
    %c0_11 = arith.constant 0 : index
    %12 = vector.load %arg1[%c0_10, %c0_11] : memref<32x128xbf16, #tpu.memory_space<vmem>>, vector<32x128xbf16>
    %13 = arith.extf %12 : vector<32x128xbf16> to vector<32x128xf32>
    %14 = arith.mulf %13, %10 : vector<32x128xf32>
    %cst_12 = arith.constant dense<0.000000e+00> : vector<32xf32>
    %15 = vector.multi_reduction <add>, %14, %cst_12 [1] : vector<32x128xf32> to vector<32xf32>
    %16 = vector.shape_cast %15 : vector<32xf32> to vector<32x1xf32>
    %17 = arith.addf %16, %11 : vector<32x1xf32>
    %c0_13 = arith.constant 0 : index
    %c0_14 = arith.constant 0 : index
    %18 = vector.load %arg6[%c0_13, %c0_14] : memref<32x1xf32, #tpu.memory_space<vmem>>, vector<32x1xf32>
    tpu.vector_store %arg6[%c0_13, %c0_14], %17 {strides = array<i32>} : memref<32x1xf32, #tpu.memory_space<vmem>>, vector<32x1xf32>,
    return
  }
  func.func @transform_0(%arg0: i32) -> (i32, i32) {
    %c0_i32 = arith.constant 0 : i32
    %c0_i32_0 = arith.constant 0 : i32
    return %arg0, %c0_i32 : i32, i32
  }
  func.func @transform_1(%arg0: i32) -> (i32, i32) {
    %c0_i32 = arith.constant 0 : i32
    %c0_i32_0 = arith.constant 0 : i32
    return %arg0, %c0_i32 : i32, i32
  }
  func.func @transform_2(%arg0: i32) -> (i32, i32) {
    %c0_i32 = arith.constant 0 : i32
    %c0_i32_0 = arith.constant 0 : i32
    %c0_i32_1 = arith.constant 0 : i32
    return %c0_i32, %c0_i32_0 : i32, i32
  }
  func.func @transform_3(%arg0: i32) -> (i32, i32) {
    %c0_i32 = arith.constant 0 : i32
    %c0_i32_0 = arith.constant 0 : i32
    %c0_i32_1 = arith.constant 0 : i32
    return %c0_i32, %c0_i32_0 : i32, i32
  }
  func.func @transform_4(%arg0: i32) -> (i32, i32) {
    %c0_i32 = arith.constant 0 : i32
    %c0_i32_0 = arith.constant 0 : i32
    %c0_i32_1 = arith.constant 0 : i32
    return %c0_i32, %c0_i32_0 : i32, i32
  }
  func.func @transform_5(%arg0: i32) -> (i32, i32) {
    %c0_i32 = arith.constant 0 : i32
    %c0_i32_0 = arith.constant 0 : i32
    return %arg0, %c0_i32 : i32, i32
  }
}

</mosaic_0001>

<bundles_post_ra>
// kernel: tpu_custom_call.1
= control target key start
LH: loop header
LB: loop body
LE: loop exit
PB: predicated region body
PF: predicated region fallthrough
CT: control target
= control target key end

     0   :  { %10 = vsyncpa [#allocation3], 0  ;;  %s872_s18 = smov 0   ;;  %s938_s0 = inlined_call_operand.vmem [shape: bf16[64,128], index: 0, kind: input, shape index: {}]   ;;  %s939_s1 = inlined_call_operand.vmem [shape: bf16[16,128], index: 1, kind: input, shape index: {}]   ;;  %s940_s2 = inlined_call_operand.vmem [shape: f32[32,8], index: 2, kind: input, shape index: {}]   ;;  %s941_s3 = inlined_call_operand.hbm [shape: bf16[128,128], index: 3, kind: input, shape index: {}]   ;;  %s942_s4 = inlined_call_operand.vmem [shape: f32[1,128], index: 4, kind: input, shape index: {}]   ;;  %s943_s5 = inlined_call_operand.vmem [shape: f32[64,1], index: 5, kind: output, shape index: {}]  }
   0x1 LB: > { %s878_s19 = sadd.s32 4294967295, %s835_s18   ;;  %p675_p0 = scmp.ge.s32.totalorder %s835_s18, 1  ;;  %s835_s18 = sphi %s872_s18, %s16_s18  }
   0x2   : > { %p162_p1 = scmp.lt.s32.totalorder %s835_s18, 3  ;;  %s837_s20 = smov [#allocation2]  }
   0x3   : > { %s177_s21 = sshll.u32 %s837_s20, 4  ;;  %p776_p3 = scmp.eq.s32.totalorder %s878_s19, 0  ;;  %s178_s21 = int_to_ptr.vmem [resolvable:$true] %s177_s21 }
   0x4   : > { %p882_p2 = pnand %p675_p0, %p162_p1  ;;  %s810_s23 = scalar_lea.vmem %s178_s21, 1024 }
   0x5   : > { %p811_p7 = scmp.ne.s32.totalorder %s178_s21, %s810_s23  ;;  %p818_p10 = scmp.lt.s32.totalorder %s178_s21, %s178_s21 }
   0x6   : > { %p772_p4 = pneg %p882_p2  ;;  %p819_p11 = scmp.lt.s32.totalorder %s810_s23, %s810_s23 }
   0x8   : > { %p773_p5 = pnand %p776_p3, %p772_p4  ;;  %p820_p12 = por %p819_p11, %p818_p10 }
   0xa   : > { %p801_p6 = pneg %p773_p5 }
   0xc   : > { %p813_p8 = pnand %p811_p7, %p801_p6 }
   0xe   : > { %p814_p9 = pneg %p813_p8 }
  0x10   : > { %p821_p13 = pnand %p820_p12, %p814_p9 }
  0x12   : > { %824 = shalt.err (!%p821_p13)
}
  0x13   : > { %s838_s24 = smov 64   ;;  %s839_s25 = smov 4  }
  0x14   : > { %775 = dma.hbm_to_vmem [thread:$0]  (!%p773_p5), %s941_s3, 1024, %s178_s21, [#allocation3], %s838_s24, %s838_s24, %s839_s25  }
  0x15   : > { %212 = sbr.rel (%p882_p2) target bundleno = 597 (0x255), region = 40 }
  0x1a   : > { %830 = dma.done.wait (%p776_p3), [#allocation3], 1024  }
  0x1b   : > { %832 = vsyncadd (%p776_p3), [#allocation3], 4294966272  ;;  %v840_v0 = vmov 0.0   ;;  %vm841_vm0 = vmmov 0   ;;  %p250_p0 = scmp.lt.s32.totalorder %s878_s19, 1  ;;  %v791_v1 = vld [vmem:[#allocation2 + $0x38] sm:$0xff]  }
  0x1c   : > { %732 = vmatprep.subr.bf16.mxu0 %v840_v0  ;;  %748 = vmatprep.mubr.msk.bf16.mxu0 %vm841_vm0, %v840_v0  ;;  %v792_v2 = vld [vmem:[#allocation2 + $0x30] sm:$0xff]   ;;  %v793_v3 = vld [vmem:[#allocation2 + $0x28] sm:$0xff]   ;;  %v693_v5 = vld [vmem:[%s942_s4] ss:$0 sm:$0xff]  ;;  %vm381_vm1 = vcmask 64512   ;;  %s680_s20 = sshll.u32 %s878_s19, 2 }
  0x1d   : > { %s251_s28 = scalar_select %p250_p0, %s878_s19, 1  ;;  %733 = vmatpush3.bf16.msra.mxu0 %v791_v1  ;;  %v794_v7 = vld [vmem:[#allocation2 + $0x20] sm:$0xff]   ;;  %v795_v9 = vld [vmem:[#allocation2 + $0x18] sm:$0xff]   ;;  %v796_v10 = vld [vmem:[#allocation2 + $0x10] sm:$0xff]   ;;  %vm588_vm2 = vcmask 7168  }
  0x1e   : > { %734 = vmatprep.subr.bf16.mxu0 %v840_v0  ;;  %v797_v11 = vld [vmem:[#allocation2 + $0x8] sm:$0xff]   ;;  %v798_v12 = vld [vmem:[#allocation2] sm:$0xff]   ;;  %v379_v17 = vld [vmem:[%s940_s2 + $0x10] sm:$0xff]  ;;  %p245_p1 = scmp.lt.s32.totalorder %s680_s20, 7 }
  0x1f   : > { %s682_s29 = sshll.u32 %s251_s28, 2  ;;  %v377_v13 = vld [vmem:[%s940_s2] sm:$0xff]  ;;  %v378_v15 = vld [vmem:[%s940_s2 + $0x8] sm:$0xff]  ;;  %v380_v20 = vld [vmem:[%s940_s2 + $0x18] sm:$0xff] }
  0x20   : > { %s253_s7 = scalar_lea.vmem %s939_s1, %s682_s29  ;;  %754 = vmatprep.mubr.msk.f32.mxu1 %vm381_vm1, %v377_v13  ;;  %s946_s20 = smov (!%p245_p1, %s680_s20), 7 }
  0x21   : > { %735 = vmatpush3.bf16.msra.mxu0 %v792_v2  ;;  %v261_v4 = vld [vmem:[%s253_s7] sm:$0xf]  ;;  %s681_s21 = sshll.u32 %s946_s20, 2  ;;  %s684_s19 = sshll.u32 %s946_s20, 3 }
  0x22   : > { %736 = vmatprep.subr.bf16.mxu0 %v840_v0  ;;  %v366_v6 = vunpack.c.l.bf16 %v261_v4  ;;  %s248_s24 = scalar_lea.vmem %s938_s0, %s681_s21  ;;  %s258_s27 = scalar_lea.vmem %s943_s5, %s684_s19 }
  0x23   : > { %v705_v22 = vld [vmem:[%s248_s24] sm:$0xff]   ;;  %v712_v26 = vld [vmem:[%s248_s24 + $0x8] sm:$0xff]  }
  0x24   : > { %v374_v8 = vmul.f32 %v693_v5, %v366_v6  ;;  %v707_v23 = vunpack.c.h.bf16 %v705_v22  ;;  %v706_v24 = vunpack.c.l.bf16 %v705_v22  ;;  %v711_v30 = vunpack.c.h.bf16 %v712_v26 }
  0x25   : > { %737 = vmatpush3.bf16.msra.mxu0 %v793_v3  ;;  %v710_v31 = vunpack.c.l.bf16 %v712_v26 }
  0x26   : > { %738 = vmatprep.subr.bf16.mxu0 %v840_v0  ;;  %375 = vadd.xlane.f32.xlu0 %v374_v8 }
  0x29   : > { %739 = vmatpush3.bf16.msra.mxu0 %v794_v7 }
  0x2a   : > { %740 = vmatprep.subr.bf16.mxu0 %v840_v0 }
  0x2d   : > { %741 = vmatpush3.bf16.msra.mxu0 %v795_v9 }
  0x2e   : > { %742 = vmatprep.subr.bf16.mxu0 %v840_v0 }
  0x31   : > { %743 = vmatpush3.bf16.msra.mxu0 %v796_v10 }
  0x32   : > { %744 = vmatprep.subr.bf16.mxu0 %v840_v0 }
  0x35   : > { %745 = vmatpush3.bf16.msra.mxu0 %v797_v11 }
  0x36   : > { %746 = vmatprep.subr.bf16.mxu0 %v840_v0 }
  0x39   : > { %747 = vmatpush3.bf16.msra.mxu0 %v798_v12 }
  0x3c   : > { %749 = vmatmul.mubr.bf16.vlgmr.msra.gmra.mxu0 %v261_v4 }
  0xaf   : > { %v376_v16 = vpop.xlane.xlu0 %375 }
  0xfc   : > { %v360_v14 = vpop.f32.mrf.mxu0 }
  0xfd   : > { %752 = vmatprep.subr.mxu1 %v360_v14 }
  0xfe   : > { %v750_v18 = vpop.f32.mrf.mxu0  ;;  %753 = vmatpush3.msra.mxu1 %v360_v14 }
  0xff   : > { %755 = vmatmul.mubr.msk.f32.vlgmr.msra.gmra.mxu1 %vm381_vm1, %v378_v15  ;;  %760 = vmatprep.subr.mxu1 %v376_v16 }
 0x100   : > { %v363_v19 = vpop.f32.mrf.mxu0  ;;  %757 = vmatprep.mubr.msk.f32.mxu1 %vm381_vm1, %v379_v17  ;;  %761 = vmatpush3.msra.mxu1 %v376_v16 }
 0x102   : > { %v751_v21 = vpop.f32.mrf.mxu0 }
 0x103   : > { %758 = vmatmul.mubr.msk.f32.gmra.mxu1 %vm381_vm1, %v380_v20 }
 0x104   : > { %762 = vmatprep.mubr.msk.f32.mxu1 %vm381_vm1, %v377_v13 }
 0x107   : > { %763 = vmatmul.mubr.msk.f32.vlgmr.msra.gmra.mxu1 %vm381_vm1, %v378_v15 }
 0x108   : > { %765 = vmatprep.mubr.msk.f32.mxu1 %vm381_vm1, %v379_v17 }
 0x10b   : > { %766 = vmatmul.mubr.msk.f32.gmra.mxu1 %vm381_vm1, %v380_v20 }
 0x1bf   : > { %v756_v25 = vpop.f32.mrf.mxu1 }
 0x1c0   : > { %v573_v27 = vmul.f32 %v756_v25, %v707_v23 }
 0x1c1   : > { %v460_v28 = vpop.f32.mrf.mxu1 }
 0x1c2   : > { %v572_v29 = vmul.f32 %v706_v24, %v460_v28  ;;  %578 = vadd.xlane.f32.xlu1 %v573_v27 }
 0x1c3   : > { %v759_v32 = vpop.f32.mrf.mxu1 }
 0x1c4   : > { %576 = vadd.xlane.f32.xlu0 %v572_v29  ;;  %v575_v34 = vmul.f32 %v759_v32, %v711_v30 }
 0x1c5   : > { %v470_v33 = vpop.f32.mrf.mxu1 }
 0x1c6   : > { %v574_v35 = vmul.f32 %v710_v31, %v470_v33 }
 0x1c7   : > { %v764_v36 = vpop.f32.mrf.mxu1 }
 0x1c8   : > { %582 = vadd.xlane.f32.xlu0 %v575_v34  ;;  %580 = vadd.xlane.f32.xlu1 %v574_v35 }
 0x1c9   : > { %v545_v37 = vpop.f32.mrf.mxu1 }
 0x1cb   : > { %v767_v39 = vpop.f32.mrf.mxu1 }
 0x1cd   : > { %v555_v43 = vpop.f32.mrf.mxu1 }
 0x24b   : > { %v579_v38 = vpop.xlane.xlu1 %578 }
 0x24c   : > { %v585_v42 = vadd.f32 %v764_v36, %v579_v38 }
 0x24d   : > { %v577_v40 = vpop.xlane.xlu0 %576 }
 0x24e   : > { %v584_v41 = vadd.f32 %v577_v40, %v545_v37  ;;  %590 = vst.msk [vmem:[%s258_s27 + $0x8] sm:$0xff] %vm588_vm2, %v585_v42 }
 0x250   : > { %589 = vst.msk [vmem:[%s258_s27] sm:$0xff] %vm588_vm2, %v584_v41 }
 0x251   : > { %v583_v44 = vpop.xlane.xlu0 %582  ;;  %v581_v45 = vpop.xlane.xlu1 %580 }
 0x252   : > { %v587_v46 = vadd.f32 %v767_v39, %v583_v44  ;;  %v586_v47 = vadd.f32 %v581_v45, %v555_v43 }
 0x254   : > { %591 = vst.msk [vmem:[%s258_s27 + $0x10] sm:$0xff] %vm588_vm2, %v586_v47  ;;  %592 = vst.msk [vmem:[%s258_s27 + $0x18] sm:$0xff] %vm588_vm2, %v587_v46 }
 0x255 PF: > { %s16_s18 = sadd.s32 1, %s835_s18  }
 0x256   : > { %p13_p2 = scmp.ge.s32.totalorder %s16_s18, 4  }
 0x258   :  { %15 = sbr.rel (!%p13_p2) target bundleno = 1 (0x1), region = 78 }
 0x25d   :  { %615 = vsyncpa [#allocation3], 1 }
 0x25e   :  { %617 = vsyncpa [#allocation3 + $0x1], 1 }

</bundles_post_ra>
